<compile_context>
chip_gen: v6e
topology: v6e:2x2x1
jax: 0.10.0
libtpu: 0.0.40
codegen_flags: <defaults>
</compile_context>

<pallas_src>
import functools

import jax
import jax.numpy as jnp
from jax.experimental import pallas as pl
from jax.experimental.pallas import tpu as pltpu

EPS = 1e-5  # nn.GroupNorm default eps


def _round_up(v, m):
    return ((v + m - 1) // m) * m


def _pick_sub_batch(B):
    """Largest small divisor of B: samples fused per grid step."""
    for bb in (8, 4, 2, 1):
        if B % bb == 0:
            return bb
    return 1


def _residual_block_kernel(x_ref, wg_ref, bg_ref, wo_ref, bo_ref,
                           skip_ref, res_ref, *, C, NCp, T, K, d, Bb, KCp):
    """One grid step = Bb batch samples.  x_ref block is (Bb, C, T)."""
    # Weights are grid-resident; load once per step.
    wg = wg_ref[...]                                        # (2C, KCp)
    bg = bg_ref[...]                                        # (2C, T)  causal-edge-exact bias
    wo = wo_ref[...]                                        # (C+NCp, C)
    bo = bo_ref[...]                                        # (C+NCp, 1)

    # Hoisted constants (JAX does not CSE broadcast_in_dim inside loops).
    lane = jax.lax.broadcasted_iota(jnp.int32, (C, T), 1)
    masks = []
    for j in range(K):
        s = (K - 1 - j) * d
        masks.append(None if s == 0 else (lane < s))
    pad_rows = KCp - K * C
    zpad = jnp.zeros((pad_rows, T), jnp.float32) if pad_rows else None
    inv_n = 1.0 / (C * T)

    for b in range(Bb):                                     # static unroll
        x = x_ref[b].astype(jnp.float32)                    # (C, T)

        # ---- shared GroupNorm(1, C) stats for sigmoid & tanh branches ----
        # one pass: two independent reductions, no serial mean->center->var
        mean = jnp.sum(x) * inv_n
        var = jnp.sum(x * x) * inv_n - mean * mean          # biased (PyTorch)
        xn = (x - mean) * jax.lax.rsqrt(var + EPS)          # affine folded into wg

        # ---- K dilated-causal taps: lane rotate + causal mask (XLU/VPU) ---
        taps = []
        for j in range(K):
            s = (K - 1 - j) * d
            if s == 0:
                taps.append(xn)
            else:
                rolled = pltpu.roll(xn, shift=s, axis=1)    # out[:, t] = xn[:, t-s]
                taps.append(jnp.where(masks[j], 0.0, rolled))
        if zpad is not None:
            taps.append(zpad)                               # pad contraction to KCp
        x_taps = jnp.concatenate(taps, axis=0)              # (KCp, T)

        # ---- one fused MXU matmul for both gate branches -----------------
        gate = jnp.dot(wg, x_taps,
                       preferred_element_type=jnp.float32) + bg   # (2C, T)
        gated = jax.nn.sigmoid(gate[:C]) * jnp.tanh(gate[C:])     # (C, T)

        # ---- shared GroupNorm stats for skip & residual branches ---------
        m2 = jnp.sum(gated) * inv_n
        v2 = jnp.sum(gated * gated) * inv_n - m2 * m2
        gn = (gated - m2) * jax.lax.rsqrt(v2 + EPS)         # affine folded into wo

        # ---- fused 1x1 convs: rows [:C]=residual, rows [C:]=skip (padded) -
        out = jnp.dot(wo, gn, preferred_element_type=jnp.float32) + bo
        res_ref[b] = out[:C].astype(res_ref.dtype)          # full, unmasked store
        skip_ref[b] = out[C:].astype(skip_ref.dtype)        # full, unmasked store


def _prepare_params(params, *, C, NC, T, K, d, KCp, NCp):
    """Fold GroupNorm affines into conv weights, fuse taps / branches, pad."""
    f32 = jnp.float32
    g_s, b_s = params['gns_g'].astype(f32), params['gns_b'].astype(f32)
    g_t, b_t = params['gnt_g'].astype(f32), params['gnt_b'].astype(f32)
    g_k, b_k = params['gnk_g'].astype(f32), params['gnk_b'].astype(f32)
    g_r, b_r = params['gnr_g'].astype(f32), params['gnr_b'].astype(f32)

    # torch conv weights (Cout, Cin, K) -> per-tap (K, Cin, Cout)
    w_sig = jnp.transpose(params['w_sig'].astype(f32), (2, 1, 0))
    w_tanh = jnp.transpose(params['w_tanh'].astype(f32), (2, 1, 0))
    b_sig = params['b_sig'].astype(f32)
    b_tanh = params['b_tanh'].astype(f32)

    # Gate weight: fold gamma (per Cin) per branch; taps stacked on the
    # contraction dim; both branches concatenated on the output dim; padded
    # with zero columns so the contraction depth is KCp (MXU-aligned).
    wg_sig = g_s[None, :, None] * w_sig                     # (K, Cin, Cout)
    wg_tanh = g_t[None, :, None] * w_tanh
    w_gate = jnp.concatenate([wg_sig.reshape(K * C, C),
                              wg_tanh.reshape(K * C, C)], axis=1)   # (K*C, 2C)
    wg = jnp.pad(w_gate.T, ((0, 0), (0, KCp - K * C)))              # (2C, KCp)

    # Beta contribution of each tap (only active where the tap is in range,
    # i.e. not reading the causal zero-padding) + conv bias -> (2C, T) table.
    bt_sig = jnp.einsum('c,kco->ko', b_s, w_sig)            # (K, C)
    bt_tanh = jnp.einsum('c,kco->ko', b_t, w_tanh)
    t_idx = jnp.arange(T)[:, None]                          # (T, 1)
    shifts = ((K - 1) - jnp.arange(K)) * d                  # (K,)
    valid = (t_idx >= shifts[None, :]).astype(f32)          # (T, K)
    bias_sig = valid @ bt_sig + b_sig[None, :]              # (T, C)
    bias_tanh = valid @ bt_tanh + b_tanh[None, :]
    bg = jnp.concatenate([bias_sig, bias_tanh], axis=1).T   # (2C, T)

    # 1x1 convs: torch (Cout, Cin, 1) -> (Cin, Cout); residual rows first,
    # skip rows (zero-padded to NCp) last.
    w_skip = params['w_skip'].astype(f32)[:, :, 0].T        # (C, NC)
    w_res = params['w_res'].astype(f32)[:, :, 0].T          # (C, C)
    w_out = jnp.concatenate([g_r[:, None] * w_res,
                             g_k[:, None] * w_skip], axis=1)        # (C, C+NC)
    wo = jnp.pad(w_out, ((0, 0), (0, NCp - NC))).T                  # (C+NCp, C)
    bo = jnp.concatenate(
        [b_r @ w_res + params['b_res'].astype(f32),
         b_k @ w_skip + params['b_skip'].astype(f32),
         jnp.zeros((NCp - NC,), f32)])[:, None]                     # (C+NCp, 1)
    return wg, bg, wo, bo


def residual_block_pallas(x_nct, params, *, kernel_size, dilation, n_channel):
    """x_nct: (B, C, T) float32, NCT like the PyTorch module.
    Returns (skip (B, n_channel, T), residual (B, C, T))."""
    B, C, T = x_nct.shape
    NC = n_channel
    K, d = kernel_size, dilation
    assert (K - 1) * d < T, "causal receptive field must be shorter than T"
    assert C % 8 == 0, "n_filter must be a multiple of 8 for this kernel"

    # MXU-aligned contraction depth for the fused gate matmul; skip-row pad.
    KCp = _round_up(K * C, 128) if K * C <= 128 else _round_up(K * C, 8)
    NCp = _round_up(NC, 8)

    wg, bg, wo, bo = _prepare_params(params, C=C, NC=NC, T=T, K=K, d=d,
                                     KCp=KCp, NCp=NCp)

    Bb = _pick_sub_batch(B)          # samples fused per grid step
    nB = B // Bb

    kernel = functools.partial(_residual_block_kernel, C=C, NCp=NCp, T=T,
                               K=K, d=d, Bb=Bb, KCp=KCp)

    cost = pl.CostEstimate(
        flops=int(B * (2 * (2 * C) * KCp * T
                       + 2 * (C + NCp) * C * T
                       + 12 * C * T)),
        transcendentals=int(B * 2 * C * T),
        bytes_accessed=int(4 * (B * C * T + B * (C + NCp) * T
                                + wg.size + bg.size + wo.size + bo.size)))

    skip_pad, res = pl.pallas_call(
        kernel,
        out_shape=(jax.ShapeDtypeStruct((B, NCp, T), x_nct.dtype),
                   jax.ShapeDtypeStruct((B, C, T), x_nct.dtype)),
        grid_spec=pltpu.PrefetchScalarGridSpec(
            num_scalar_prefetch=0,
            grid=(nB,),
            in_specs=[pl.BlockSpec((Bb, C, T), lambda b: (b, 0, 0)),
                      pl.BlockSpec(wg.shape, lambda b: (0, 0)),
                      pl.BlockSpec(bg.shape, lambda b: (0, 0)),
                      pl.BlockSpec(wo.shape, lambda b: (0, 0)),
                      pl.BlockSpec(bo.shape, lambda b: (0, 0))],
            out_specs=[pl.BlockSpec((Bb, NCp, T), lambda b: (b, 0, 0)),
                       pl.BlockSpec((Bb, C, T), lambda b: (b, 0, 0))]),
        compiler_params=pltpu.CompilerParams(
            dimension_semantics=("parallel",)),
        cost_estimate=cost,
    )(x_nct, wg, bg, wo, bo)

    skip = skip_pad[:, :NC] if NCp != NC else skip_pad
    return skip, res


def ref_forward(x_nct, p, K, d):
    """Pure-JAX reference mirroring the PyTorch module (NCT layout)."""
    def gn(v, g, b):
        mean = v.mean(axis=(1, 2), keepdims=True)
        var = ((v - mean) ** 2).mean(axis=(1, 2), keepdims=True)
        return (v - mean) / jnp.sqrt(var + EPS) * g[None, :, None] + b[None, :, None]

    def causal_conv(v, w, b):
        pad = (K - 1) * d
        out = jax.lax.conv_general_dilated(
            v, w, window_strides=(1,), padding=[(pad, pad)],
            rhs_dilation=(d,), dimension_numbers=('NCH', 'OIH', 'NCH'))
        out = out + b[None, :, None]
        return out[:, :, :v.shape[2]]            # == x[:, :, :-pad] in torch

    def conv1x1(v, w, b):
        return jnp.einsum('bct,oc->bot', v, w[:, :, 0]) + b[None, :, None]

    x1 = jax.nn.sigmoid(causal_conv(gn(x_nct, p['gns_g'], p['gns_b']),
                                    p['w_sig'], p['b_sig']))
    x2 = jnp.tanh(causal_conv(gn(x_nct, p['gnt_g'], p['gnt_b']),
                              p['w_tanh'], p['b_tanh']))
    g = x1 * x2
    skip = conv1x1(gn(g, p['gnk_g'], p['gnk_b']), p['w_skip'], p['b_skip'])
    res = conv1x1(gn(g, p['gnr_g'], p['gnr_b']), p['w_res'], p['b_res'])
    return skip, res


if __name__ == "__main__":
    # ResidualBlock(n_channel=4, n_mul=8, kernel_size=3, dilation_rate=2)
    n_channel, n_mul, K, dil = 4, 8, 3, 2
    C = n_channel * n_mul                        # n_filter = 32
    B, T = 2, 128

    key = jax.random.PRNGKey(0)
    keys = jax.random.split(key, 20)

    def u(k, shape, scale=0.1):
        return (jax.random.uniform(k, shape, jnp.float32) - 0.5) * 2.0 * scale

    params = {
        'gns_g': 1.0 + u(keys[0], (C,)), 'gns_b': u(keys[1], (C,)),
        'w_sig': u(keys[2], (C, C, K)),  'b_sig': u(keys[3], (C,)),
        'gnt_g': 1.0 + u(keys[4], (C,)), 'gnt_b': u(keys[5], (C,)),
        'w_tanh': u(keys[6], (C, C, K)), 'b_tanh': u(keys[7], (C,)),
        'gnk_g': 1.0 + u(keys[8], (C,)), 'gnk_b': u(keys[9], (C,)),
        'w_skip': u(keys[10], (n_channel, C, 1)), 'b_skip': u(keys[11], (n_channel,)),
        'gnr_g': 1.0 + u(keys[12], (C,)), 'gnr_b': u(keys[13], (C,)),
        'w_res': u(keys[14], (C, C, 1)), 'b_res': u(keys[15], (C,)),
    }
    x = jax.random.normal(keys[16], (B, C, T), jnp.float32)   # NCT, like PyTorch

    skip, res = residual_block_pallas(x, params, kernel_size=K,
                                      dilation=dil, n_channel=n_channel)
    jax.block_until_ready((skip, res))

    skip_r, res_r = ref_forward(x, params, K, dil)
    assert skip.shape == (B, n_channel, T) and res.shape == (B, C, T)
    assert jnp.allclose(skip, skip_r, atol=2e-4, rtol=2e-4), "skip mismatch"
    assert jnp.allclose(res, res_r, atol=2e-4, rtol=2e-4), "residual mismatch"

    print("KERNEL_OK")
</pallas_src>

<mosaic_0001>
module attributes {stable_mosaic.version = 11 : i64} {
  func.func @_residual_block_kernel(%arg0: i32, %arg1: memref<2x32x128xf32, #tpu.memory_space<vmem>>, %arg2: memref<64x128xf32, #tpu.memory_space<vmem>>, %arg3: memref<64x128xf32, #tpu.memory_space<vmem>>, %arg4: memref<40x32xf32, #tpu.memory_space<vmem>>, %arg5: memref<40x1xf32, #tpu.memory_space<vmem>>, %arg6: memref<2x8x128xf32, #tpu.memory_space<vmem>>, %arg7: memref<2x32x128xf32, #tpu.memory_space<vmem>>) attributes {dimension_semantics = [#tpu.dimension_semantics<parallel>], iteration_bounds = array<i64: 1>, scalar_prefetch = 0 : i64, scratch_operands = 0 : i64, tpu.core_type = #tpu.core_type<tc>, window_params = [{transform_indices = @transform_0, window_bounds = array<i64: 2, 32, 128>}, {pipeline_mode = #tpu.pipeline_mode<synchronous>, transform_indices = @transform_1, window_bounds = array<i64: 64, 128>}, {pipeline_mode = #tpu.pipeline_mode<synchronous>, transform_indices = @transform_2, window_bounds = array<i64: 64, 128>}, {pipeline_mode = #tpu.pipeline_mode<synchronous>, transform_indices = @transform_3, window_bounds = array<i64: 40, 32>}, {pipeline_mode = #tpu.pipeline_mode<synchronous>, transform_indices = @transform_4, window_bounds = array<i64: 40, 1>}, {transform_indices = @transform_5, window_bounds = array<i64: 2, 8, 128>}, {transform_indices = @transform_6, window_bounds = array<i64: 2, 32, 128>}]} {
    %c0 = arith.constant 0 : index
    %c0_0 = arith.constant 0 : index
    %0 = vector.load %arg2[%c0, %c0_0] : memref<64x128xf32, #tpu.memory_space<vmem>>, vector<64x128xf32>
    %c0_1 = arith.constant 0 : index
    %c0_2 = arith.constant 0 : index
    %1 = vector.load %arg3[%c0_1, %c0_2] : memref<64x128xf32, #tpu.memory_space<vmem>>, vector<64x128xf32>
    %c0_3 = arith.constant 0 : index
    %c0_4 = arith.constant 0 : index
    %2 = vector.load %arg4[%c0_3, %c0_4] : memref<40x32xf32, #tpu.memory_space<vmem>>, vector<40x32xf32>
    %c0_5 = arith.constant 0 : index
    %c0_6 = arith.constant 0 : index
    %3 = vector.load %arg5[%c0_5, %c0_6] : memref<40x1xf32, #tpu.memory_space<vmem>>, vector<40x1xf32>
    %4 = tpu.iota {dimensions = array<i32: 1>} : vector<32x128xi32>
    %c4_i32 = arith.constant 4 : i32
    %5 = vector.broadcast %c4_i32 : i32 to vector<32x128xi32>
    %6 = arith.cmpi slt, %4, %5 : vector<32x128xi32>
    %c2_i32 = arith.constant 2 : i32
    %7 = vector.broadcast %c2_i32 : i32 to vector<32x128xi32>
    %8 = arith.cmpi slt, %4, %7 : vector<32x128xi32>
    %cst = arith.constant 0.000000e+00 : f32
    %9 = vector.broadcast %cst : f32 to vector<32x128xf32>
    %c0_7 = arith.constant 0 : index
    %c0_8 = arith.constant 0 : index
    %c0_9 = arith.constant 0 : index
    %10 = vector.load %arg1[%c0_7, %c0_8, %c0_9] : memref<2x32x128xf32, #tpu.memory_space<vmem>>, vector<1x32x128xf32>
    %11 = vector.shape_cast %10 : vector<1x32x128xf32> to vector<32x128xf32>
    %12 = vector.shape_cast %11 : vector<32x128xf32> to vector<1x32x128xf32>
    %cst_10 = arith.constant dense<0.000000e+00> : vector<1xf32>
    %13 = vector.multi_reduction <add>, %12, %cst_10 [1, 2] : vector<1x32x128xf32> to vector<1xf32>
    %14 = vector.shape_cast %13 : vector<1xf32> to vector<1x1x1xf32>
    %15 = vector.extract %14[0, 0, 0] : f32 from vector<1x1x1xf32>
    %cst_11 = arith.constant 2.44140625E-4 : f32
    %16 = arith.mulf %15, %cst_11 : f32
    %17 = arith.mulf %11, %11 : vector<32x128xf32>
    %18 = vector.shape_cast %17 : vector<32x128xf32> to vector<1x32x128xf32>
    %cst_12 = arith.constant dense<0.000000e+00> : vector<1xf32>
    %19 = vector.multi_reduction <add>, %18, %cst_12 [1, 2] : vector<1x32x128xf32> to vector<1xf32>
    %20 = vector.shape_cast %19 : vector<1xf32> to vector<1x1x1xf32>
    %21 = vector.extract %20[0, 0, 0] : f32 from vector<1x1x1xf32>
    %cst_13 = arith.constant 2.44140625E-4 : f32
    %22 = arith.mulf %21, %cst_13 : f32
    %23 = arith.mulf %16, %16 : f32
    %24 = arith.subf %22, %23 : f32
    %25 = vector.broadcast %16 : f32 to vector<32x128xf32>
    %26 = arith.subf %11, %25 : vector<32x128xf32>
    %cst_14 = arith.constant 9.99999974E-6 : f32
    %27 = arith.addf %24, %cst_14 : f32
    %28 = math.rsqrt %27 : f32
    %29 = vector.broadcast %28 : f32 to vector<32x128xf32>
    %30 = arith.mulf %26, %29 : vector<32x128xf32>
    %c4_i32_15 = arith.constant 4 : i32
    %31 = tpu.dynamic_rotate %30 by %c4_i32_15 dim 1 : vector<32x128xf32>, i32 -> vector<32x128xf32>
    %cst_16 = arith.constant 0.000000e+00 : f32
    %32 = vector.broadcast %cst_16 : f32 to vector<32x128xf32>
    %33 = arith.select %6, %32, %31 : vector<32x128xi1>, vector<32x128xf32>
    %c2_i32_17 = arith.constant 2 : i32
    %34 = tpu.dynamic_rotate %30 by %c2_i32_17 dim 1 : vector<32x128xf32>, i32 -> vector<32x128xf32>
    %cst_18 = arith.constant 0.000000e+00 : f32
    %35 = vector.broadcast %cst_18 : f32 to vector<32x128xf32>
    %36 = arith.select %8, %35, %34 : vector<32x128xi1>, vector<32x128xf32>
    %37 = tpu.concatenate %33, %36, %30, %9 in 0 : vector<32x128xf32>, vector<32x128xf32>, vector<32x128xf32>, vector<32x128xf32> -> vector<128x128xf32>
    %cst_19 = arith.constant dense<0.000000e+00> : vector<64x128xf32>
    %38 = tpu.matmul %0, %37, %cst_19 {dimension_numbers = #tpu.dot_dimension_numbers<[1], [0], [0], [1], [0, 0, 1, 1], [], []>} : vector<64x128xf32>, vector<128x128xf32>, vector<64x128xf32> -> vector<64x128xf32>
    %39 = arith.addf %38, %1 : vector<64x128xf32>
    %40 = vector.extract_strided_slice %39 {offsets = [0, 0], sizes = [32, 128], strides = [1, 1]} : vector<64x128xf32> to vector<32x128xf32>
    %41 = arith.negf %40 : vector<32x128xf32>
    %42 = math.exp %41 : vector<32x128xf32>
    %cst_20 = arith.constant 1.000000e+00 : f32
    %43 = vector.broadcast %cst_20 : f32 to vector<32x128xf32>
    %44 = arith.addf %43, %42 : vector<32x128xf32>
    %45 = arith.divf %43, %44 : vector<32x128xf32>
    %46 = vector.extract_strided_slice %39 {offsets = [32, 0], sizes = [32, 128], strides = [1, 1]} : vector<64x128xf32> to vector<32x128xf32>
    %47 = math.tanh %46 : vector<32x128xf32>
    %48 = arith.mulf %45, %47 : vector<32x128xf32>
    %49 = vector.shape_cast %48 : vector<32x128xf32> to vector<1x32x128xf32>
    %cst_21 = arith.constant dense<0.000000e+00> : vector<1xf32>
    %50 = vector.multi_reduction <add>, %49, %cst_21 [1, 2] : vector<1x32x128xf32> to vector<1xf32>
    %51 = vector.shape_cast %50 : vector<1xf32> to vector<1x1x1xf32>
    %52 = vector.extract %51[0, 0, 0] : f32 from vector<1x1x1xf32>
    %cst_22 = arith.constant 2.44140625E-4 : f32
    %53 = arith.mulf %52, %cst_22 : f32
    %54 = arith.mulf %48, %48 : vector<32x128xf32>
    %55 = vector.shape_cast %54 : vector<32x128xf32> to vector<1x32x128xf32>
    %cst_23 = arith.constant dense<0.000000e+00> : vector<1xf32>
    %56 = vector.multi_reduction <add>, %55, %cst_23 [1, 2] : vector<1x32x128xf32> to vector<1xf32>
    %57 = vector.shape_cast %56 : vector<1xf32> to vector<1x1x1xf32>
    %58 = vector.extract %57[0, 0, 0] : f32 from vector<1x1x1xf32>
    %cst_24 = arith.constant 2.44140625E-4 : f32
    %59 = arith.mulf %58, %cst_24 : f32
    %60 = arith.mulf %53, %53 : f32
    %61 = arith.subf %59, %60 : f32
    %62 = vector.broadcast %53 : f32 to vector<32x128xf32>
    %63 = arith.subf %48, %62 : vector<32x128xf32>
    %cst_25 = arith.constant 9.99999974E-6 : f32
    %64 = arith.addf %61, %cst_25 : f32
    %65 = math.rsqrt %64 : f32
    %66 = vector.broadcast %65 : f32 to vector<32x128xf32>
    %67 = arith.mulf %63, %66 : vector<32x128xf32>
    %cst_26 = arith.constant dense<0.000000e+00> : vector<40x128xf32>
    %68 = tpu.matmul %2, %67, %cst_26 {dimension_numbers = #tpu.dot_dimension_numbers<[1], [0], [0], [1], [0, 0, 1, 1], [], []>} : vector<40x32xf32>, vector<32x128xf32>, vector<40x128xf32> -> vector<40x128xf32>
    %69 = vector.broadcast %3 : vector<40x1xf32> to vector<40x128xf32>
    %70 = arith.addf %68, %69 : vector<40x128xf32>
    %71 = vector.extract_strided_slice %70 {offsets = [0, 0], sizes = [32, 128], strides = [1, 1]} : vector<40x128xf32> to vector<32x128xf32>
    %c0_27 = arith.constant 0 : index
    %c0_28 = arith.constant 0 : index
    %c0_29 = arith.constant 0 : index
    %72 = vector.load %arg7[%c0_27, %c0_28, %c0_29] : memref<2x32x128xf32, #tpu.memory_space<vmem>>, vector<1x32x128xf32>
    %73 = vector.shape_cast %72 : vector<1x32x128xf32> to vector<32x128xf32>
    %74 = vector.shape_cast %71 : vector<32x128xf32> to vector<1x32x128xf32>
    tpu.vector_store %arg7[%c0_27, %c0_28, %c0_29], %74 {strides = array<i32>} : memref<2x32x128xf32, #tpu.memory_space<vmem>>, vector<1x32x128xf32>,
    %75 = vector.extract_strided_slice %70 {offsets = [32, 0], sizes = [8, 128], strides = [1, 1]} : vector<40x128xf32> to vector<8x128xf32>
    %c0_30 = arith.constant 0 : index
    %c0_31 = arith.constant 0 : index
    %c0_32 = arith.constant 0 : index
    %76 = vector.load %arg6[%c0_30, %c0_31, %c0_32] : memref<2x8x128xf32, #tpu.memory_space<vmem>>, vector<1x8x128xf32>
    %77 = vector.shape_cast %76 : vector<1x8x128xf32> to vector<8x128xf32>
    %78 = vector.shape_cast %75 : vector<8x128xf32> to vector<1x8x128xf32>
    tpu.vector_store %arg6[%c0_30, %c0_31, %c0_32], %78 {strides = array<i32>} : memref<2x8x128xf32, #tpu.memory_space<vmem>>, vector<1x8x128xf32>,
    %c1 = arith.constant 1 : index
    %c0_33 = arith.constant 0 : index
    %c0_34 = arith.constant 0 : index
    %79 = vector.load %arg1[%c1, %c0_33, %c0_34] : memref<2x32x128xf32, #tpu.memory_space<vmem>>, vector<1x32x128xf32>
    %80 = vector.shape_cast %79 : vector<1x32x128xf32> to vector<32x128xf32>
    %81 = vector.shape_cast %80 : vector<32x128xf32> to vector<1x32x128xf32>
    %cst_35 = arith.constant dense<0.000000e+00> : vector<1xf32>
    %82 = vector.multi_reduction <add>, %81, %cst_35 [1, 2] : vector<1x32x128xf32> to vector<1xf32>
    %83 = vector.shape_cast %82 : vector<1xf32> to vector<1x1x1xf32>
    %84 = vector.extract %83[0, 0, 0] : f32 from vector<1x1x1xf32>
    %cst_36 = arith.constant 2.44140625E-4 : f32
    %85 = arith.mulf %84, %cst_36 : f32
    %86 = arith.mulf %80, %80 : vector<32x128xf32>
    %87 = vector.shape_cast %86 : vector<32x128xf32> to vector<1x32x128xf32>
    %cst_37 = arith.constant dense<0.000000e+00> : vector<1xf32>
    %88 = vector.multi_reduction <add>, %87, %cst_37 [1, 2] : vector<1x32x128xf32> to vector<1xf32>
    %89 = vector.shape_cast %88 : vector<1xf32> to vector<1x1x1xf32>
    %90 = vector.extract %89[0, 0, 0] : f32 from vector<1x1x1xf32>
    %cst_38 = arith.constant 2.44140625E-4 : f32
    %91 = arith.mulf %90, %cst_38 : f32
    %92 = arith.mulf %85, %85 : f32
    %93 = arith.subf %91, %92 : f32
    %94 = vector.broadcast %85 : f32 to vector<32x128xf32>
    %95 = arith.subf %80, %94 : vector<32x128xf32>
    %cst_39 = arith.constant 9.99999974E-6 : f32
    %96 = arith.addf %93, %cst_39 : f32
    %97 = math.rsqrt %96 : f32
    %98 = vector.broadcast %97 : f32 to vector<32x128xf32>
    %99 = arith.mulf %95, %98 : vector<32x128xf32>
    %c4_i32_40 = arith.constant 4 : i32
    %100 = tpu.dynamic_rotate %99 by %c4_i32_40 dim 1 : vector<32x128xf32>, i32 -> vector<32x128xf32>
    %cst_41 = arith.constant 0.000000e+00 : f32
    %101 = vector.broadcast %cst_41 : f32 to vector<32x128xf32>
    %102 = arith.select %6, %101, %100 : vector<32x128xi1>, vector<32x128xf32>
    %c2_i32_42 = arith.constant 2 : i32
    %103 = tpu.dynamic_rotate %99 by %c2_i32_42 dim 1 : vector<32x128xf32>, i32 -> vector<32x128xf32>
    %cst_43 = arith.constant 0.000000e+00 : f32
    %104 = vector.broadcast %cst_43 : f32 to vector<32x128xf32>
    %105 = arith.select %8, %104, %103 : vector<32x128xi1>, vector<32x128xf32>
    %106 = tpu.concatenate %102, %105, %99, %9 in 0 : vector<32x128xf32>, vector<32x128xf32>, vector<32x128xf32>, vector<32x128xf32> -> vector<128x128xf32>
    %cst_44 = arith.constant dense<0.000000e+00> : vector<64x128xf32>
    %107 = tpu.matmul %0, %106, %cst_44 {dimension_numbers = #tpu.dot_dimension_numbers<[1], [0], [0], [1], [0, 0, 1, 1], [], []>} : vector<64x128xf32>, vector<128x128xf32>, vector<64x128xf32> -> vector<64x128xf32>
    %108 = arith.addf %107, %1 : vector<64x128xf32>
    %109 = vector.extract_strided_slice %108 {offsets = [0, 0], sizes = [32, 128], strides = [1, 1]} : vector<64x128xf32> to vector<32x128xf32>
    %110 = arith.negf %109 : vector<32x128xf32>
    %111 = math.exp %110 : vector<32x128xf32>
    %cst_45 = arith.constant 1.000000e+00 : f32
    %112 = vector.broadcast %cst_45 : f32 to vector<32x128xf32>
    %113 = arith.addf %112, %111 : vector<32x128xf32>
    %114 = arith.divf %112, %113 : vector<32x128xf32>
    %115 = vector.extract_strided_slice %108 {offsets = [32, 0], sizes = [32, 128], strides = [1, 1]} : vector<64x128xf32> to vector<32x128xf32>
    %116 = math.tanh %115 : vector<32x128xf32>
    %117 = arith.mulf %114, %116 : vector<32x128xf32>
    %118 = vector.shape_cast %117 : vector<32x128xf32> to vector<1x32x128xf32>
    %cst_46 = arith.constant dense<0.000000e+00> : vector<1xf32>
    %119 = vector.multi_reduction <add>, %118, %cst_46 [1, 2] : vector<1x32x128xf32> to vector<1xf32>
    %120 = vector.shape_cast %119 : vector<1xf32> to vector<1x1x1xf32>
    %121 = vector.extract %120[0, 0, 0] : f32 from vector<1x1x1xf32>
    %cst_47 = arith.constant 2.44140625E-4 : f32
    %122 = arith.mulf %121, %cst_47 : f32
    %123 = arith.mulf %117, %117 : vector<32x128xf32>
    %124 = vector.shape_cast %123 : vector<32x128xf32> to vector<1x32x128xf32>
    %cst_48 = arith.constant dense<0.000000e+00> : vector<1xf32>
    %125 = vector.multi_reduction <add>, %124, %cst_48 [1, 2] : vector<1x32x128xf32> to vector<1xf32>
    %126 = vector.shape_cast %125 : vector<1xf32> to vector<1x1x1xf32>
    %127 = vector.extract %126[0, 0, 0] : f32 from vector<1x1x1xf32>
    %cst_49 = arith.constant 2.44140625E-4 : f32
    %128 = arith.mulf %127, %cst_49 : f32
    %129 = arith.mulf %122, %122 : f32
    %130 = arith.subf %128, %129 : f32
    %131 = vector.broadcast %122 : f32 to vector<32x128xf32>
    %132 = arith.subf %117, %131 : vector<32x128xf32>
    %cst_50 = arith.constant 9.99999974E-6 : f32
    %133 = arith.addf %130, %cst_50 : f32
    %134 = math.rsqrt %133 : f32
    %135 = vector.broadcast %134 : f32 to vector<32x128xf32>
    %136 = arith.mulf %132, %135 : vector<32x128xf32>
    %cst_51 = arith.constant dense<0.000000e+00> : vector<40x128xf32>
    %137 = tpu.matmul %2, %136, %cst_51 {dimension_numbers = #tpu.dot_dimension_numbers<[1], [0], [0], [1], [0, 0, 1, 1], [], []>} : vector<40x32xf32>, vector<32x128xf32>, vector<40x128xf32> -> vector<40x128xf32>
    %138 = vector.broadcast %3 : vector<40x1xf32> to vector<40x128xf32>
    %139 = arith.addf %137, %138 : vector<40x128xf32>
    %140 = vector.extract_strided_slice %139 {offsets = [0, 0], sizes = [32, 128], strides = [1, 1]} : vector<40x128xf32> to vector<32x128xf32>
    %c1_52 = arith.constant 1 : index
    %c0_53 = arith.constant 0 : index
    %c0_54 = arith.constant 0 : index
    %141 = vector.load %arg7[%c1_52, %c0_53, %c0_54] : memref<2x32x128xf32, #tpu.memory_space<vmem>>, vector<1x32x128xf32>
    %142 = vector.shape_cast %141 : vector<1x32x128xf32> to vector<32x128xf32>
    %143 = vector.shape_cast %140 : vector<32x128xf32> to vector<1x32x128xf32>
    tpu.vector_store %arg7[%c1_52, %c0_53, %c0_54], %143 {strides = array<i32>} : memref<2x32x128xf32, #tpu.memory_space<vmem>>, vector<1x32x128xf32>,
    %144 = vector.extract_strided_slice %139 {offsets = [32, 0], sizes = [8, 128], strides = [1, 1]} : vector<40x128xf32> to vector<8x128xf32>
    %c1_55 = arith.constant 1 : index
    %c0_56 = arith.constant 0 : index
    %c0_57 = arith.constant 0 : index
    %145 = vector.load %arg6[%c1_55, %c0_56, %c0_57] : memref<2x8x128xf32, #tpu.memory_space<vmem>>, vector<1x8x128xf32>
    %146 = vector.shape_cast %145 : vector<1x8x128xf32> to vector<8x128xf32>
    %147 = vector.shape_cast %144 : vector<8x128xf32> to vector<1x8x128xf32>
    tpu.vector_store %arg6[%c1_55, %c0_56, %c0_57], %147 {strides = array<i32>} : memref<2x8x128xf32, #tpu.memory_space<vmem>>, vector<1x8x128xf32>,
    return
  }
  func.func @transform_0(%arg0: i32) -> (i32, i32, i32) {
    %c0_i32 = arith.constant 0 : i32
    %c0_i32_0 = arith.constant 0 : i32
    %c0_i32_1 = arith.constant 0 : i32
    return %arg0, %c0_i32, %c0_i32_0 : i32, i32, i32
  }
  func.func @transform_1(%arg0: i32) -> (i32, i32) {
    %c0_i32 = arith.constant 0 : i32
    %c0_i32_0 = arith.constant 0 : i32
    %c0_i32_1 = arith.constant 0 : i32
    return %c0_i32, %c0_i32_0 : i32, i32
  }
  func.func @transform_2(%arg0: i32) -> (i32, i32) {
    %c0_i32 = arith.constant 0 : i32
    %c0_i32_0 = arith.constant 0 : i32
    %c0_i32_1 = arith.constant 0 : i32
    return %c0_i32, %c0_i32_0 : i32, i32
  }
  func.func @transform_3(%arg0: i32) -> (i32, i32) {
    %c0_i32 = arith.constant 0 : i32
    %c0_i32_0 = arith.constant 0 : i32
    %c0_i32_1 = arith.constant 0 : i32
    return %c0_i32, %c0_i32_0 : i32, i32
  }
  func.func @transform_4(%arg0: i32) -> (i32, i32) {
    %c0_i32 = arith.constant 0 : i32
    %c0_i32_0 = arith.constant 0 : i32
    %c0_i32_1 = arith.constant 0 : i32
    return %c0_i32, %c0_i32_0 : i32, i32
  }
  func.func @transform_5(%arg0: i32) -> (i32, i32, i32) {
    %c0_i32 = arith.constant 0 : i32
    %c0_i32_0 = arith.constant 0 : i32
    %c0_i32_1 = arith.constant 0 : i32
    return %arg0, %c0_i32, %c0_i32_0 : i32, i32, i32
  }
  func.func @transform_6(%arg0: i32) -> (i32, i32, i32) {
    %c0_i32 = arith.constant 0 : i32
    %c0_i32_0 = arith.constant 0 : i32
    %c0_i32_1 = arith.constant 0 : i32
    return %arg0, %c0_i32, %c0_i32_0 : i32, i32, i32
  }
}

</mosaic_0001>

<bundles_post_ra>
// kernel: tpu_custom_call.1
= control target key start
LH: loop header
LB: loop body
LE: loop exit
PB: predicated region body
PF: predicated region fallthrough
CT: control target
= control target key end

     0   :  { %12 = vsyncpa [#allocation3], 0  ;;  %s1727_s0 = inlined_call_operand.vmem [shape: f32[2,32,128], index: 0, kind: input, shape index: {}]   ;;  %s1728_s1 = inlined_call_operand.hbm [shape: f32[64,128], index: 1, kind: input, shape index: {}]   ;;  %s1729_s2 = inlined_call_operand.hbm [shape: f32[64,128], index: 2, kind: input, shape index: {}]   ;;  %s1730_s3 = inlined_call_operand.vmem [shape: f32[40,32], index: 3, kind: input, shape index: {}]   ;;  %s1731_s4 = inlined_call_operand.vmem [shape: f32[40,1], index: 4, kind: input, shape index: {}]   ;;  %s1732_s5 = inlined_call_operand.hbm [shape: f32[2,8,128], index: 5, kind: output, shape index: {0}]   ;;  %s1733_s6 = inlined_call_operand.hbm [shape: f32[2,32,128], index: 6, kind: output, shape index: {1}]  }
   0x1   :  { %13 = vsyncpa [#allocation6], 0 }
   0x2   :  { %14 = vsyncpa [#allocation4], 0 }
   0x3   :  { %15 = vsyncpa [#allocation9], 0  ;;  %s1285_s21 = smov [#allocation2]  }
   0x4   :  { %s23_s22 = sshll.u32 %s1285_s21, 4  ;;  %s24_s22 = int_to_ptr.vmem [resolvable:$true] %s23_s22 }
   0x5   :  { %s1205_s23 = scalar_lea.vmem %s24_s22, 1024  ;;  %p1210_p1 = scmp.lt.s32.totalorder %s24_s22, %s24_s22 }
   0x6   :  { %p1206_p0 = scmp.ne.s32.totalorder %s24_s22, %s1205_s23  ;;  %p1211_p2 = scmp.lt.s32.totalorder %s1205_s23, %s1205_s23 }
   0x8   :  { %p1212_p3 = por %p1211_p2, %p1210_p1 }
   0xa   :  { %p1213_p4 = pnand %p1212_p3, %p1206_p0 }
   0xc   :  { %1216 = shalt.err (!%p1213_p4)
}
   0xd   :  { %s1286_s24 = smov 128   ;;  %s1287_s25 = smov 8  }
   0xe   :  { %29 = dma.hbm_to_vmem [thread:$0]  %s1728_s1, 1024, %s24_s22, [#allocation3], %s1286_s24, %s1286_s24, %s1287_s25  }
   0xf   :  { %s1288_s28 = smov [#allocation5]  }
  0x10   :  { %s35_s29 = sshll.u32 %s1288_s28, 4  ;;  %s36_s29 = int_to_ptr.vmem [resolvable:$true] %s35_s29 }
  0x11   :  { %s1225_s30 = scalar_lea.vmem %s36_s29, 1024  ;;  %p1230_p6 = scmp.lt.s32.totalorder %s36_s29, %s36_s29 }
  0x12   :  { %p1226_p5 = scmp.ne.s32.totalorder %s36_s29, %s1225_s30  ;;  %p1231_p7 = scmp.lt.s32.totalorder %s1225_s30, %s1225_s30 }
  0x14   :  { %p1232_p8 = por %p1231_p7, %p1230_p6 }
  0x16   :  { %p1233_p9 = pnand %p1232_p8, %p1226_p5 }
  0x18   :  { %1236 = shalt.err (!%p1233_p9)
}
  0x19   :  { %41 = dma.hbm_to_vmem [thread:$0]  %s1729_s2, 1024, %s36_s29, [#allocation6], %s1286_s24, %s1286_s24, %s1287_s25  }
  0x1a   :  { %1277 = dma.done.wait [#allocation3], 1024  }
  0x1b   :  { %1278 = vsyncadd [#allocation3], 4294966272 }
  0x1c   :  { %1279 = dma.done.wait [#allocation6], 1024  }
  0x1d   :  { %1280 = vsyncadd [#allocation6], 4294966272  ;;  %v82_v0 = vld [vmem:[%s1727_s0] sm:$0xff]  ;;  %v83_v1 = vld [vmem:[%s1727_s0 + $0x8] sm:$0xff]  ;;  %s1289_s23 = smov 2   ;;  %s1290_s26 = smov 4   ;;  %v78_v41 = vlaneseq }
  0x1e   :  { %v84_v2 = vld [vmem:[%s1727_s0 + $0x10] sm:$0xff]  ;;  %v86_v3 = vadd.f32 %v83_v1, %v82_v0  ;;  %v99_v4 = vmul.f32 %v82_v0, %v82_v0  ;;  %v100_v5 = vmul.f32 %v83_v1, %v83_v1  ;;  %v85_v7 = vld [vmem:[%s1727_s0 + $0x18] sm:$0xff]  ;;  %v1360_v40 = vld [vmem:[#allocation2] sm:$0xff]  ;;  %vm1292_vm2 = vmmov 0   ;;  %s1294_s29 = smov [#allocation7]  }
  0x1f   :  { %v101_v6 = vmul.f32 %v84_v2, %v84_v2  ;;  %v102_v9 = vmul.f32 %v85_v7, %v85_v7  ;;  %1002 = vmatprep.mubr.f32.mxu0 %v1360_v40  ;;  %v1366_v42 = vand.u32 127, %v78_v41  ;;  %v1398_v51 = vld [vmem:[#allocation2 + $0x8] sm:$0xff]  ;;  %v1402_v52 = vld [vmem:[#allocation2 + $0x10] sm:$0xff]  ;;  %v1408_v53 = vld [vmem:[#allocation2 + $0x18] sm:$0xff]  ;;  %vm364_vm3 = vcmask 261120   ;;  %s835_s30 = sshll.u32 %s1294_s29, 4  ;;  %s836_s30 = int_to_ptr.vmem [resolvable:$true] %s835_s30 }
  0x20   :  { %v87_v8 = vadd.f32 %v86_v3, %v84_v2  ;;  %v103_v10 = vadd.f32 %v100_v5, %v99_v4  ;;  %v1410_v54 = vld [vmem:[#allocation2 + $0x20] sm:$0xff]  ;;  %v1414_v55 = vld [vmem:[#allocation2 + $0x28] sm:$0xff]  ;;  %v1416_v56 = vld [vmem:[#allocation2 + $0x30] sm:$0xff]  ;;  %s1237_s7 = scalar_lea.vmem %s836_s30, 256  ;;  %p1242_p11 = scmp.lt.s32.totalorder %s836_s30, %s836_s30 }
  0x21   :  { %vm918_vm0 = vcmp.ge.s32.totalorder %v1366_v42, 2  ;;  %vm919_vm1 = vcmp.ge.s32.totalorder %v1366_v42, 4  ;;  %v1420_v57 = vld [vmem:[#allocation2 + $0x38] sm:$0xff]  ;;  %v1423_v58 = vld [vmem:[#allocation5 + $0x8] sm:$0xff]  ;;  %v1425_v60 = vld [vmem:[#allocation5] sm:$0xff]  ;;  %p1238_p10 = scmp.ne.s32.totalorder %s836_s30, %s1237_s7  ;;  %p1243_p12 = scmp.lt.s32.totalorder %s1237_s7, %s1237_s7 }
  0x22   :  { %v88_v11 = vadd.f32 %v87_v8, %v85_v7  ;;  %v104_v12 = vadd.f32 %v103_v10, %v101_v6  ;;  %v1428_v63 = vld [vmem:[#allocation5 + $0x18] sm:$0xff]  ;;  %v1431_v3 = vld [vmem:[#allocation5 + $0x10] sm:$0xff] }
  0x23   :  { %p1244_p13 = por %p1243_p12, %p1242_p11 }
  0x24   :  { %89 = vadd.xlane.f32.xlu0 %v88_v11  ;;  %v105_v13 = vadd.f32 %v104_v12, %v102_v9  ;;  %v1435_v12 = vld [vmem:[#allocation5 + $0x28] sm:$0xff] }
  0x25   :  { %p1245_p0 = pnand %p1244_p13, %p1238_p10 }
  0x28   :  { %106 = vadd.xlane.f32.xlu0 %v105_v13  ;;  %v1437_v13 = vld [vmem:[#allocation5 + $0x20] sm:$0xff] }
  0xad   :  { %v90_v14 = vpop.xlane.xlu0 %89 }
  0xae   :  { %v91_v15 = vrot.slane %v90_v14, 4 }
  0xb0   :  { %v92_v16 = vadd.f32 %v91_v15, %v90_v14 }
  0xb1   :  { %v107_v17 = vpop.xlane.xlu0 %106 }
  0xb2   :  { %v93_v18 = vrot.slane %v92_v16, 2  ;;  %v108_v19 = vrot.slane %v107_v17, 4 }
  0xb4   :  { %v109_v20 = vadd.f32 %v108_v19, %v107_v17  ;;  %v94_v21 = vadd.f32 %v93_v18, %v92_v16  ;;  %v1440_v16 = vld [vmem:[#allocation5 + $0x38] sm:$0xff] }
  0xb6   :  { %v110_v22 = vrot.slane %v109_v20, 2  ;;  %v95_v23 = vrot.slane %v94_v21, 1 }
  0xb8   :  { %v96_v24 = vadd.f32 %v95_v23, %v94_v21  ;;  %v111_v25 = vadd.f32 %v110_v22, %v109_v20  ;;  %v1443_v21 = vld [vmem:[#allocation5 + $0x30] sm:$0xff] }
  0xba   :  { %1104 = vpush %v96_v24  ;;  %v112_v26 = vrot.slane %v111_v25, 1 }
  0xbc   :  { %v113_v27 = vadd.f32 %v112_v26, %v111_v25 }
  0xbe   :  { %1106 = vpush %v113_v27 }
  0xeb   :  { %s1105_s15 = spop %1104 }
  0xec   :  { %s98_s16 = smul.f32 0.00024414063, %s1105_s15 }
  0xee   :  { %s116_s17 = smul.f32 %s98_s16, %s98_s16  ;;  %v118_v30 = vstv %s98_s16 }
  0xef   :  { %s1107_s18 = spop %1106  ;;  %v120_v31 = vsub.f32 %v83_v1, %v118_v30  ;;  %v122_v32 = vsub.f32 %v85_v7, %v118_v30  ;;  %v121_v34 = vsub.f32 %v84_v2, %v118_v30  ;;  %v119_v38 = vsub.f32 %v82_v0, %v118_v30  ;;  %v1450_v30 = vld [vmem:[%s1727_s0 + $0x20] sm:$0xff] }
  0xf0   :  { %s115_s19 = smul.f32 0.00024414063, %s1107_s18 }
  0xf2   :  { %s117_s20 = ssub.f32 %s115_s19, %s116_s17 }
  0xf4   :  { %s123_s21 = sadd.f32 1e-05, %s117_s20 }
  0xf6   :  { %v124_v28 = vstv %s123_s21 }
  0xf7   :  { %1141 = vrsqrt.f32 %v124_v28 }
 0x104   :  { %v1142_v29 = vpop.eup %1141 }
 0x105   :  { %1108 = vpush %v1142_v29 }
 0x136   :  { %s1109_s22 = spop %1108 }
 0x137   :  { %v127_v33 = vstv %s1109_s22 }
 0x138   :  { %v129_v35 = vmul.f32 %v127_v33, %v120_v31  ;;  %v131_v36 = vmul.f32 %v127_v33, %v122_v32  ;;  %v130_v37 = vmul.f32 %v127_v33, %v121_v34  ;;  %v128_v39 = vmul.f32 %v127_v33, %v119_v38  ;;  %v1455_v31 = vld [vmem:[%s1727_s0 + $0x28] sm:$0xff]  ;;  %v1464_v38 = vld [vmem:[%s1727_s0 + $0x30] sm:$0xff] }
 0x13a   :  { %150 = vrot.lane.b32.xlu1 %v131_v36, %s1289_s23  ;;  %978 = vmatprep.subr.mxu0 %v131_v36 }
 0x13b   :  { %146 = vrot.lane.b32.xlu0 %v129_v35, %s1289_s23  ;;  %979 = vmatpush3.msra.mxu0 %v131_v36 }
 0x13c   :  { %980 = vmatprep.subr.mxu0 %v130_v37 }
 0x13d   :  { %981 = vmatpush3.msra.mxu0 %v130_v37 }
 0x13e   :  { %148 = vrot.lane.b32.xlu1 %v130_v37, %s1289_s23  ;;  %982 = vmatprep.subr.mxu0 %v129_v35 }
 0x13f   :  { %983 = vmatpush3.msra.mxu0 %v129_v35 }
 0x140   :  { %984 = vmatprep.subr.mxu0 %v128_v39 }
 0x141   :  { %985 = vmatpush3.msra.mxu0 %v128_v39 }
 0x142   :  { %144 = vrot.lane.b32.xlu1 %v128_v39, %s1289_s23 }
 0x146   :  { %138 = vrot.lane.b32.xlu1 %v131_v36, %s1290_s26  ;;  %v494_v36 = vmul.f32 %v1455_v31, %v1455_v31 }
 0x14a   :  { %136 = vrot.lane.b32.xlu1 %v130_v37, %s1290_s26 }
 0x14e   :  { %134 = vrot.lane.b32.xlu1 %v129_v35, %s1290_s26  ;;  %v493_v35 = vmul.f32 %v1450_v30, %v1450_v30 }
 0x152   :  { %132 = vrot.lane.b32.xlu1 %v128_v39, %s1290_s26 }
 0x1ac   :  { %v151_v43 = vpop.permute.xlu1 %150 }
 0x1ad   :  { %986 = vmatprep.subr.msk.mxu0 %vm918_vm0, %v151_v43  ;;  %v147_v45 = vpop.permute.xlu0 %146 }
 0x1ae   :  { %987 = vmatpush3.msk.msra.mxu0 %vm918_vm0, %v151_v43 }
 0x1b0   :  { %v149_v44 = vpop.permute.xlu1 %148 }
 0x1b1   :  { %988 = vmatprep.subr.msk.mxu0 %vm918_vm0, %v149_v44 }
 0x1b2   :  { %989 = vmatpush3.msk.msra.mxu0 %vm918_vm0, %v149_v44 }
 0x1b3   :  { %990 = vmatprep.subr.msk.mxu0 %vm918_vm0, %v147_v45 }
 0x1b4   :  { %v145_v46 = vpop.permute.xlu1 %144  ;;  %991 = vmatpush3.msk.msra.mxu0 %vm918_vm0, %v147_v45 }
 0x1b5   :  { %992 = vmatprep.subr.msk.mxu0 %vm918_vm0, %v145_v46 }
 0x1b6   :  { %993 = vmatpush3.msk.msra.mxu0 %vm918_vm0, %v145_v46 }
 0x1b8   :  { %v139_v47 = vpop.permute.xlu1 %138 }
 0x1b9   :  { %994 = vmatprep.subr.msk.mxu0 %vm919_vm1, %v139_v47 }
 0x1ba   :  { %995 = vmatpush3.msk.msra.mxu0 %vm919_vm1, %v139_v47  ;;  %v1475_v47 = vld [vmem:[%s1727_s0 + $0x38] sm:$0xff] }
 0x1bc   :  { %v137_v48 = vpop.permute.xlu1 %136 }
 0x1bd   :  { %996 = vmatprep.subr.msk.mxu0 %vm919_vm1, %v137_v48 }
 0x1be   :  { %997 = vmatpush3.msk.msra.mxu0 %vm919_vm1, %v137_v48  ;;  %v495_v48 = vmul.f32 %v1464_v38, %v1464_v38 }
 0x1c0   :  { %v135_v49 = vpop.permute.xlu1 %134 }
 0x1c1   :  { %998 = vmatprep.subr.msk.mxu0 %vm919_vm1, %v135_v49 }
 0x1c2   :  { %999 = vmatpush3.msk.msra.mxu0 %vm919_vm1, %v135_v49  ;;  %v497_v49 = vadd.f32 %v494_v36, %v493_v35  ;;  %v1291_v35 = vmov 0.0  }
 0x1c3   :  { %1014 = vmatprep.subr.mxu1 %v1291_v35  ;;  %1022 = vmatprep.mubr.msk.f32.mxu1 %vm1292_vm2, %v1291_v35 }
 0x1c4   :  { %v133_v50 = vpop.permute.xlu1 %132 }
 0x1c5   :  { %1000 = vmatprep.subr.msk.mxu0 %vm919_vm1, %v133_v50 }
 0x1c6   :  { %1001 = vmatpush3.msk.msra.mxu0 %vm919_vm1, %v133_v50 }
 0x1c7   :  { %1003 = vmatmul.mubr.f32.vlgmr.msra.gmra.mxu0 %v1398_v51  ;;  %1073 = vmatprep.subr.mxu0 %v1291_v35 }
 0x1c8   :  { %1005 = vmatprep.mubr.f32.mxu0 %v1402_v52 }
 0x1cb   :  { %1006 = vmatmul.mubr.f32.gmra.mxu0 %v1408_v53 }
 0x1cc   :  { %1008 = vmatprep.mubr.f32.mxu0 %v1410_v54 }
 0x1cf   :  { %1009 = vmatmul.mubr.f32.gmra.mxu0 %v1414_v55 }
 0x1d0   :  { %1011 = vmatprep.mubr.f32.mxu0 %v1416_v56 }
 0x1d3   :  { %1012 = vmatmul.mubr.f32.gmra.mxu0 %v1420_v57 }
 0x1d4   :  { %1081 = vmatprep.mubr.msk.f32.mxu0 %vm1292_vm2, %v1291_v35 }
 0x287   :  { %v1004_v59 = vpop.f32.mrf.mxu0 }
 0x288   :  { %v228_v61 = vadd.f32 %v1004_v59, %v1423_v58  ;;  %v480_v59 = vadd.f32 %v1455_v31, %v1450_v30 }
 0x289   :  { %v222_v62 = vpop.f32.mrf.mxu0 }
 0x28a   :  { %v881_v0 = vmul.f32 -1.442695, %v228_v61  ;;  %v223_v1 = vadd.f32 %v222_v62, %v1425_v60 }
 0x28b   :  { %v1007_v2 = vpop.f32.mrf.mxu0 }
 0x28c   :  { %1143 = vpow2.f32 %v881_v0  ;;  %v880_v4 = vmul.f32 -1.442695, %v223_v1  ;;  %v238_v5 = vadd.f32 %v1007_v2, %v1428_v63  ;;  %v496_v2 = vmul.f32 %v1475_v47, %v1475_v47 }
 0x28d   :  { %v232_v6 = vpop.f32.mrf.mxu0 }
 0x28e   :  { %1145 = vpow2.f32 %v880_v4  ;;  %v883_v7 = vmul.f32 -1.442695, %v238_v5  ;;  %v233_v8 = vadd.f32 %v232_v6, %v1431_v3 }
 0x28f   :  { %v1010_v9 = vpop.f32.mrf.mxu0 }
 0x290   :  { %1147 = vpow2.f32 %v883_v7  ;;  %v882_v10 = vmul.f32 -1.442695, %v233_v8  ;;  %v248_v15 = vadd.f32 %v1010_v9, %v1435_v12  ;;  %v498_v7 = vadd.f32 %v497_v49, %v495_v48 }
 0x291   :  { %v242_v11 = vpop.f32.mrf.mxu0 }
 0x292   :  { %1149 = vpow2.f32 %v882_v10  ;;  %v243_v18 = vadd.f32 %v242_v11, %v1437_v13  ;;  %v481_v11 = vadd.f32 %v1464_v38, %v480_v59 }
 0x293   :  { %v1013_v14 = vpop.f32.mrf.mxu0  ;;  %1151 = vtanh.f32 %v248_v15  ;;  %v499_v15 = vadd.f32 %v498_v7, %v496_v2 }
 0x294   :  { %v258_v23 = vadd.f32 %v1013_v14, %v1440_v16 }
 0x295   :  { %v252_v20 = vpop.f32.mrf.mxu0 }
 0x296   :  { %v253_v26 = vadd.f32 %v252_v20, %v1443_v21 }
 0x299   :  { %v1144_v17 = vpop.eup %1143 }
 0x29a   :  { %v274_v19 = vadd.f32 1.0, %v1144_v17  ;;  %v482_v17 = vadd.f32 %v1475_v47, %v481_v11 }
 0x29b   :  { %v1146_v22 = vpop.eup %1145 }
 0x29c   :  { %1153 = vrcp.f32 %v274_v19  ;;  %v273_v24 = vadd.f32 1.0, %v1146_v22 }
 0x29d   :  { %v1148_v25 = vpop.eup %1147  ;;  %1155 = vtanh.f32 %v243_v18 }
 0x29e   :  { %1157 = vrcp.f32 %v273_v24  ;;  %v276_v27 = vadd.f32 1.0, %v1148_v25 }
 0x29f   :  { %v1150_v28 = vpop.eup %1149  ;;  %1159 = vtanh.f32 %v258_v23 }
 0x2a0   :  { %1161 = vrcp.f32 %v276_v27  ;;  %v275_v29 = vadd.f32 1.0, %v1150_v28  ;;  %v1152_v32 = vpop.eup %1151 }
 0x2a1   :  { %1163 = vtanh.f32 %v253_v26 }
 0x2a2   :  { %1165 = vrcp.f32 %v275_v29 }
 0x2a9   :  { %v1154_v33 = vpop.eup %1153 }
 0x2aa   :  { %v1156_v34 = vpop.eup %1155  ;;  %v1468_v43 = vmul.f32 %v1154_v33, %v1152_v32 }
 0x2ab   :  { %v1158_v37 = vpop.eup %1157 }
 0x2ac   :  { %v1160_v39 = vpop.eup %1159  ;;  %v1466_v41 = vmul.f32 %v1158_v37, %v1156_v34  ;;  %v307_v1 = vmul.f32 %v1468_v43, %v1468_v43 }
 0x2ad   :  { %v1162_v44 = vpop.eup %1161 }
 0x2ae   :  { %v1164_v45 = vpop.eup %1163  ;;  %v306_v46 = vmul.f32 %v1466_v41, %v1466_v41  ;;  %v1483_v62 = vmul.f32 %v1162_v44, %v1160_v39  ;;  %v293_v0 = vadd.f32 %v1468_v43, %v1466_v41 }
 0x2af   :  { %v1166_v50 = vpop.eup %1165 }
 0x2b0   :  { %v1481_v61 = vmul.f32 %v1166_v50, %v1164_v45  ;;  %v310_v6 = vadd.f32 %v307_v1, %v306_v46  ;;  %v309_v9 = vmul.f32 %v1483_v62, %v1483_v62 }
 0x2b2   :  { %v294_v4 = vadd.f32 %v293_v0, %v1481_v61  ;;  %v308_v5 = vmul.f32 %v1481_v61, %v1481_v61 }
 0x2b4   :  { %v295_v8 = vadd.f32 %v294_v4, %v1483_v62  ;;  %v311_v10 = vadd.f32 %v310_v6, %v308_v5 }
 0x2b6   :  { %296 = vadd.xlane.f32.xlu1 %v295_v8  ;;  %v312_v14 = vadd.f32 %v311_v10, %v309_v9 }
 0x2b8   :  { %313 = vadd.xlane.f32.xlu0 %v312_v14 }
 0x2ba   :  { %500 = vadd.xlane.f32.xlu1 %v499_v15 }
 0x2bc   :  { %483 = vadd.xlane.f32.xlu0 %v482_v17 }
 0x33f   :  { %v297_v18 = vpop.xlane.xlu1 %296 }
 0x340   :  { %v298_v19 = vrot.slane %v297_v18, 4 }
 0x341   :  { %v314_v20 = vpop.xlane.xlu0 %313 }
 0x342   :  { %v299_v22 = vadd.f32 %v298_v19, %v297_v18  ;;  %v315_v23 = vrot.slane %v314_v20, 4 }
 0x343   :  { %v501_v37 = vpop.xlane.xlu1 %500 }
 0x344   :  { %v300_v24 = vrot.slane %v299_v22, 2  ;;  %v316_v25 = vadd.f32 %v315_v23, %v314_v20  ;;  %v502_v44 = vrot.slane %v501_v37, 4  ;;  %v1537_v20 = vld [vmem:[%s1730_s3 + $0x10] sm:$0xff]  ;;  %v1547_v23 = vld [vmem:[%s1730_s3 + $0x18] sm:$0xff] }
 0x345   :  { %v484_v36 = vpop.xlane.xlu0 %483 }
 0x346   :  { %v317_v26 = vrot.slane %v316_v25, 2  ;;  %v301_v27 = vadd.f32 %v300_v24, %v299_v22  ;;  %v485_v39 = vrot.slane %v484_v36, 4  ;;  %v503_v46 = vadd.f32 %v502_v44, %v501_v37 }
 0x348   :  { %v302_v28 = vrot.slane %v301_v27, 1  ;;  %v318_v29 = vadd.f32 %v317_v26, %v316_v25  ;;  %v486_v45 = vadd.f32 %v485_v39, %v484_v36  ;;  %v504_v50 = vrot.slane %v503_v46, 2 }
 0x34a   :  { %v303_v32 = vadd.f32 %v302_v28, %v301_v27  ;;  %v319_v33 = vrot.slane %v318_v29, 1  ;;  %v487_v49 = vrot.slane %v486_v45, 2  ;;  %v505_v0 = vadd.f32 %v504_v50, %v503_v46  ;;  %v1558_v27 = vld [vmem:[%s1730_s3 + $0x20] sm:$0xff] }
 0x34c   :  { %1110 = vpush %v303_v32  ;;  %v320_v34 = vadd.f32 %v319_v33, %v318_v29  ;;  %v488_v59 = vadd.f32 %v487_v49, %v486_v45  ;;  %v506_v2 = vrot.slane %v505_v0, 1 }
 0x34e   :  { %1112 = vpush %v320_v34  ;;  %v489_v1 = vrot.slane %v488_v59, 1  ;;  %v507_v6 = vadd.f32 %v506_v2, %v505_v0  ;;  %v1293_v0 = vmov 0  }
 0x34f   :  { %1140 = vset.pattern.permute.xlu1 %v1293_v0  ;;  %1139 = vset.pattern.permute.xlu0 %v1293_v0  ;;  %v73_v0 = vld [vmem:[%s1731_s4] sm:$0xff] }
 0x350   :  { %v490_v5 = vadd.f32 %v489_v1, %v488_v59 }
 0x37d   :  { %s1111_s0 = spop %1110 }
 0x37e   :  { %s305_s10 = smul.f32 0.00024414063, %s1111_s0 }
 0x37f   :  { %s1113_s11 = spop %1112 }
 0x380   :  { %s323_s12 = smul.f32 %s305_s10, %s305_s10  ;;  %v325_v7 = vstv %s305_s10 }
 0x381   :  { %s322_s13 = smul.f32 0.00024414063, %s1113_s11  ;;  %v329_v8 = vsub.f32 %v1483_v62, %v325_v7  ;;  %v328_v11 = vsub.f32 %v1481_v61, %v325_v7  ;;  %v327_v15 = vsub.f32 %v1468_v43, %v325_v7  ;;  %v326_v17 = vsub.f32 %v1466_v41, %v325_v7  ;;  %v1518_v61 = vld [vmem:[%s1730_s3] sm:$0xff]  ;;  %v1528_v41 = vld [vmem:[%s1730_s3 + $0x8] sm:$0xff] }
 0x383   :  { %s324_s2 = ssub.f32 %s322_s13, %s323_s12 }
 0x385   :  { %s330_s14 = sadd.f32 1e-05, %s324_s2 }
 0x387   :  { %v331_v48 = vstv %s330_s14 }
 0x388   :  { %1167 = vrsqrt.f32 %v331_v48 }
 0x395   :  { %v1168_v4 = vpop.eup %1167 }
 0x396   :  { %1114 = vpush %v1168_v4 }
 0x397   :  { %1116 = vpush %v490_v5 }
 0x398   :  { %1118 = vpush %v507_v6 }
 0x3c7   :  { %s1115_s15 = spop %1114 }
 0x3c8   :  { %v334_v9 = vstv %s1115_s15  ;;  %s1117_s16 = spop %1116 }
 0x3c9   :  { %s1506_s17 = smul.f32 0.00024414063, %s1117_s16  ;;  %s1119_s18 = spop %1118  ;;  %v338_v10 = vmul.f32 %v334_v9, %v329_v8  ;;  %v337_v14 = vmul.f32 %v334_v9, %v328_v11  ;;  %v336_v62 = vmul.f32 %v334_v9, %v327_v15  ;;  %v335_v18 = vmul.f32 %v334_v9, %v326_v17 }
 0x3ca   :  { %s509_s19 = smul.f32 0.00024414063, %s1119_s18 }
 0x3cb   :  { %s510_s20 = smul.f32 %s1506_s17, %s1506_s17  ;;  %1015 = vmatpush3.msra.mxu1 %v338_v10  ;;  %v512_v22 = vstv %s1506_s17 }
 0x3cc   :  { %1016 = vmatprep.subr.mxu1 %v1291_v35  ;;  %v515_v24 = vsub.f32 %v1464_v38, %v512_v22  ;;  %v516_v25 = vsub.f32 %v1475_v47, %v512_v22  ;;  %v513_v32 = vsub.f32 %v1450_v30, %v512_v22  ;;  %v514_v38 = vsub.f32 %v1455_v31, %v512_v22 }
 0x3cd   :  { %s511_s21 = ssub.f32 %s509_s19, %s510_s20  ;;  %1017 = vmatpush3.msra.mxu1 %v337_v14 }
 0x3ce   :  { %1018 = vmatprep.subr.mxu1 %v1291_v35 }
 0x3cf   :  { %s517_s22 = sadd.f32 1e-05, %s511_s21  ;;  %1019 = vmatpush3.msra.mxu1 %v336_v62 }
 0x3d0   :  { %1020 = vmatprep.subr.mxu1 %v1291_v35 }
 0x3d1   :  { %v518_v43 = vstv %s517_s22  ;;  %1021 = vmatpush3.msra.mxu1 %v335_v18 }
 0x3d2   :  { %1169 = vrsqrt.f32 %v518_v43  ;;  %1023 = vmatmul.mubr.msk.f32.vlgmr.msra.gmra.mxu1 %vm364_vm3, %v1518_v61 }
 0x3d3   :  { %1025 = vmatprep.mubr.msk.f32.mxu1 %vm1292_vm2, %v1291_v35 }
 0x3d6   :  { %1026 = vmatmul.mubr.msk.f32.gmra.mxu1 %vm364_vm3, %v1528_v41 }
 0x3d7   :  { %1028 = vmatprep.mubr.msk.f32.mxu1 %vm1292_vm2, %v1291_v35 }
 0x3da   :  { %1029 = vmatmul.mubr.msk.f32.gmra.mxu1 %vm364_vm3, %v1537_v20 }
 0x3db   :  { %1031 = vmatprep.mubr.msk.f32.mxu1 %vm1292_vm2, %v1291_v35 }
 0x3de   :  { %1032 = vmatmul.mubr.msk.f32.gmra.mxu1 %vm364_vm3, %v1547_v23 }
 0x3df   :  { %v1170_v19 = vpop.eup %1169  ;;  %1034 = vmatprep.mubr.msk.f32.mxu1 %vm1292_vm2, %v1291_v35 }
 0x3e0   :  { %1120 = vpush %v1170_v19 }
 0x3e2   :  { %1035 = vmatmul.mubr.msk.f32.gmra.mxu1 %vm364_vm3, %v1558_v27 }
 0x3e3   :  { %1061 = vmatprep.mubr.f32.mxu1 %v1360_v40 }
 0x411   :  { %s1121_s0 = spop %1120 }
 0x412   :  { %v521_v26 = vstv %s1121_s0 }
 0x413   :  { %v524_v28 = vmul.f32 %v521_v26, %v515_v24  ;;  %v525_v29 = vmul.f32 %v521_v26, %v516_v25  ;;  %v522_v47 = vmul.f32 %v521_v26, %v513_v32  ;;  %v523_v33 = vmul.f32 %v521_v26, %v514_v38 }
 0x415   :  { %544 = vrot.lane.b32.xlu0 %v525_v29, %s1289_s23  ;;  %1037 = vmatprep.subr.mxu1 %v525_v29 }
 0x416   :  { %542 = vrot.lane.b32.xlu1 %v524_v28, %s1289_s23  ;;  %1038 = vmatpush3.msra.mxu1 %v525_v29 }
 0x417   :  { %1039 = vmatprep.subr.mxu1 %v524_v28 }
 0x418   :  { %1040 = vmatpush3.msra.mxu1 %v524_v28 }
 0x419   :  { %1041 = vmatprep.subr.mxu1 %v523_v33  ;;  %538 = vrot.lane.b32.xlu0 %v522_v47, %s1289_s23 }
 0x41a   :  { %540 = vrot.lane.b32.xlu1 %v523_v33, %s1289_s23  ;;  %1042 = vmatpush3.msra.mxu1 %v523_v33 }
 0x41b   :  { %1043 = vmatprep.subr.mxu1 %v522_v47 }
 0x41c   :  { %1044 = vmatpush3.msra.mxu1 %v522_v47 }
 0x41d   :  { %530 = vrot.lane.b32.xlu0 %v524_v28, %s1290_s26 }
 0x41e   :  { %532 = vrot.lane.b32.xlu1 %v525_v29, %s1290_s26 }
 0x421   :  { %526 = vrot.lane.b32.xlu0 %v522_v47, %s1290_s26 }
 0x422   :  { %528 = vrot.lane.b32.xlu1 %v523_v33, %s1290_s26 }
 0x487   :  { %v545_v40 = vpop.permute.xlu0 %544 }
 0x488   :  { %v543_v30 = vpop.permute.xlu1 %542  ;;  %1045 = vmatprep.subr.msk.mxu1 %vm918_vm0, %v545_v40 }
 0x489   :  { %1046 = vmatpush3.msk.msra.mxu1 %vm918_vm0, %v545_v40 }
 0x48a   :  { %1047 = vmatprep.subr.msk.mxu1 %vm918_vm0, %v543_v30 }
 0x48b   :  { %v539_v31 = vpop.permute.xlu0 %538  ;;  %1048 = vmatpush3.msk.msra.mxu1 %vm918_vm0, %v543_v30 }
 0x48c   :  { %v541_v34 = vpop.permute.xlu1 %540 }
 0x48d   :  { %1049 = vmatprep.subr.msk.mxu1 %vm918_vm0, %v541_v34 }
 0x48e   :  { %1050 = vmatpush3.msk.msra.mxu1 %vm918_vm0, %v541_v34 }
 0x48f   :  { %1051 = vmatprep.subr.msk.mxu1 %vm918_vm0, %v539_v31  ;;  %v531_v37 = vpop.permute.xlu0 %530 }
 0x490   :  { %v533_v36 = vpop.permute.xlu1 %532  ;;  %1052 = vmatpush3.msk.msra.mxu1 %vm918_vm0, %v539_v31 }
 0x491   :  { %1053 = vmatprep.subr.msk.mxu1 %vm919_vm1, %v533_v36 }
 0x492   :  { %1054 = vmatpush3.msk.msra.mxu1 %vm919_vm1, %v533_v36  ;;  %v1593_v39 = vpop.f32.mrf.mxu1 }
 0x493   :  { %1055 = vmatprep.subr.msk.mxu1 %vm919_vm1, %v531_v37  ;;  %v527_v46 = vpop.permute.xlu0 %526 }
 0x494   :  { %v529_v44 = vpop.permute.xlu1 %528  ;;  %1056 = vmatpush3.msk.msra.mxu1 %vm919_vm1, %v531_v37  ;;  %v1024_v45 = vpop.f32.mrf.mxu1 }
 0x495   :  { %1057 = vmatprep.subr.msk.mxu1 %vm919_vm1, %v529_v44 }
 0x496   :  { %1058 = vmatpush3.msk.msra.mxu1 %vm919_vm1, %v529_v44  ;;  %v1603_v48 = vpop.f32.mrf.mxu1 }
 0x497   :  { %1059 = vmatprep.subr.msk.mxu1 %vm919_vm1, %v527_v46 }
 0x498   :  { %1060 = vmatpush3.msk.msra.mxu1 %vm919_vm1, %v527_v46  ;;  %v1027_v49 = vpop.f32.mrf.mxu1 }
 0x499   :  { %1062 = vmatmul.mubr.f32.vlgmr.msra.gmra.mxu1 %v1398_v51  ;;  %1096 = vmatprep.subr.mxu1 %v1291_v35 }
 0x49a   :  { %1064 = vmatprep.mubr.f32.mxu1 %v1402_v52  ;;  %v1619_v42 = vpop.f32.mrf.mxu1 }
 0x49c   :  { %v1030_v51 = vpop.f32.mrf.mxu1 }
 0x49d   :  { %1065 = vmatmul.mubr.f32.gmra.mxu1 %v1408_v53 }
 0x49e   :  { %1067 = vmatprep.mubr.f32.mxu1 %v1410_v54  ;;  %v1621_v50 = vpop.f32.mrf.mxu1 }
 0x4a0   :  { %v1033_v59 = vpop.f32.mrf.mxu1 }
 0x4a1   :  { %1068 = vmatmul.mubr.f32.gmra.mxu1 %v1414_v55  ;;  %v74_v59 = vld [vmem:[%s1731_s4 + $0x8] sm:$0xff] }
 0x4a2   :  { %1070 = vmatprep.mubr.f32.mxu1 %v1416_v56  ;;  %v1623_v52 = vpop.f32.mrf.mxu1 }
 0x4a4   :  { %v1036_v53 = vpop.f32.mrf.mxu1 }
 0x4a5   :  { %1071 = vmatmul.mubr.f32.gmra.mxu1 %v1420_v57  ;;  %v75_v53 = vld [vmem:[%s1731_s4 + $0x10] sm:$0xff] }
 0x4a6   :  { %1093 = vmatprep.mubr.msk.f32.mxu1 %vm1292_vm2, %v1291_v35 }
 0x559   :  { %v1063_v54 = vpop.f32.mrf.mxu1 }
 0x55a   :  { %v622_v55 = vadd.f32 %v1063_v54, %v1423_v58  ;;  %v76_v54 = vld [vmem:[%s1731_s4 + $0x18] sm:$0xff] }
 0x55b   :  { %v616_v56 = vpop.f32.mrf.mxu1 }
 0x55c   :  { %v910_v57 = vmul.f32 -1.442695, %v622_v55  ;;  %v617_v1 = vadd.f32 %v616_v56, %v1425_v60  ;;  %v77_v55 = vld [vmem:[%s1731_s4 + $0x20] sm:$0xff] }
 0x55d   :  { %v1066_v2 = vpop.f32.mrf.mxu1 }
 0x55e   :  { %1171 = vpow2.f32 %v910_v57  ;;  %v909_v4 = vmul.f32 -1.442695, %v617_v1  ;;  %v632_v5 = vadd.f32 %v1066_v2, %v1428_v63 }
 0x55f   :  { %v626_v6 = vpop.f32.mrf.mxu1 }
 0x560   :  { %1173 = vpow2.f32 %v909_v4  ;;  %v912_v7 = vmul.f32 -1.442695, %v632_v5  ;;  %v627_v8 = vadd.f32 %v626_v6, %v1431_v3 }
 0x561   :  { %v1069_v9 = vpop.f32.mrf.mxu1 }
 0x562   :  { %1175 = vpow2.f32 %v912_v7  ;;  %v911_v10 = vmul.f32 -1.442695, %v627_v8  ;;  %v642_v14 = vadd.f32 %v1069_v9, %v1435_v12 }
 0x563   :  { %v636_v11 = vpop.f32.mrf.mxu1 }
 0x564   :  { %1177 = vpow2.f32 %v911_v10  ;;  %v637_v60 = vadd.f32 %v636_v11, %v1437_v13 }
 0x565   :  { %v1072_v58 = vpop.f32.mrf.mxu1  ;;  %1179 = vtanh.f32 %v642_v14 }
 0x566   :  { %v652_v63 = vadd.f32 %v1072_v58, %v1440_v16 }
 0x567   :  { %v646_v17 = vpop.f32.mrf.mxu1 }
 0x568   :  { %v647_v19 = vadd.f32 %v646_v17, %v1443_v21 }
 0x56b   :  { %v1172_v15 = vpop.eup %1171 }
 0x56c   :  { %v668_v62 = vadd.f32 1.0, %v1172_v15 }
 0x56d   :  { %v1174_v18 = vpop.eup %1173 }
 0x56e   :  { %1181 = vrcp.f32 %v668_v62  ;;  %v667_v43 = vadd.f32 1.0, %v1174_v18 }
 0x56f   :  { %v1176_v3 = vpop.eup %1175  ;;  %1183 = vtanh.f32 %v637_v60 }
 0x570   :  { %1185 = vrcp.f32 %v667_v43  ;;  %v670_v22 = vadd.f32 1.0, %v1176_v3 }
 0x571   :  { %v1178_v24 = vpop.eup %1177  ;;  %1187 = vtanh.f32 %v652_v63 }
 0x572   :  { %1189 = vrcp.f32 %v670_v22  ;;  %v669_v12 = vadd.f32 1.0, %v1178_v24  ;;  %v1180_v13 = vpop.eup %1179 }
 0x573   :  { %1191 = vtanh.f32 %v647_v19 }
 0x574   :  { %1193 = vrcp.f32 %v669_v12 }
 0x57b   :  { %v1182_v25 = vpop.eup %1181 }
 0x57c   :  { %v1184_v26 = vpop.eup %1183  ;;  %v1635_v32 = vmul.f32 %v1182_v25, %v1180_v13 }
 0x57d   :  { %v1186_v28 = vpop.eup %1185 }
 0x57e   :  { %v1188_v29 = vpop.eup %1187  ;;  %v1633_v16 = vmul.f32 %v1186_v28, %v1184_v26  ;;  %v701_v34 = vmul.f32 %v1635_v32, %v1635_v32 }
 0x57f   :  { %v1190_v38 = vpop.eup %1189 }
 0x580   :  { %v1192_v47 = vpop.eup %1191  ;;  %v700_v21 = vmul.f32 %v1633_v16, %v1633_v16  ;;  %v1641_v30 = vmul.f32 %v1190_v38, %v1188_v29  ;;  %v687_v31 = vadd.f32 %v1635_v32, %v1633_v16 }
 0x581   :  { %v1194_v33 = vpop.eup %1193 }
 0x582   :  { %v1639_v40 = vmul.f32 %v1194_v33, %v1192_v47  ;;  %v704_v44 = vadd.f32 %v701_v34, %v700_v21  ;;  %v703_v46 = vmul.f32 %v1641_v30, %v1641_v30 }
 0x584   :  { %v688_v36 = vadd.f32 %v687_v31, %v1639_v40  ;;  %v702_v37 = vmul.f32 %v1639_v40, %v1639_v40 }
 0x586   :  { %v689_v45 = vadd.f32 %v688_v36, %v1641_v30  ;;  %v705_v49 = vadd.f32 %v704_v44, %v702_v37 }
 0x588   :  { %690 = vadd.xlane.f32.xlu1 %v689_v45  ;;  %v706_v51 = vadd.f32 %v705_v49, %v703_v46 }
 0x58a   :  { %707 = vadd.xlane.f32.xlu0 %v706_v51 }
 0x599   :  { %346 = vperm.xlu1 %1140, %v74_v59  }
 0x59d   :  { %351 = vperm.xlu1 %1140, %v75_v53  }
 0x5a0   :  { %341 = vperm.xlu0 %1139, %v73_v0  }
 0x5a1   :  { %356 = vperm.xlu1 %1140, %v76_v54  }
 0x5a5   :  { %361 = vperm.xlu1 %1140, %v77_v55  }
 0x611   :  { %v691_v56 = vpop.xlane.xlu1 %690 }
 0x612   :  { %v692_v57 = vrot.slane %v691_v56, 4 }
 0x613   :  { %v708_v1 = vpop.xlane.xlu0 %707 }
 0x614   :  { %v693_v2 = vadd.f32 %v692_v57, %v691_v56  ;;  %v709_v4 = vrot.slane %v708_v1, 4 }
 0x615   :  { %v1668_v5 = vpop.permute.xlu1 %346 }
 0x616   :  { %v694_v6 = vrot.slane %v693_v2, 2  ;;  %v710_v7 = vadd.f32 %v709_v4, %v708_v1  ;;  %v452_v8 = vadd.f32 %v1603_v48, %v1668_v5 }
 0x618   :  { %v711_v9 = vrot.slane %v710_v7, 2  ;;  %471 = vst [vmem:[#allocation8 + $0x8] sm:$0xff] %v452_v8  ;;  %v695_v10 = vadd.f32 %v694_v6, %v693_v2 }
 0x619   :  { %v1672_v11 = vpop.permute.xlu1 %351 }
 0x61a   :  { %v457_v58 = vadd.f32 %v1619_v42, %v1672_v11  ;;  %v696_v14 = vrot.slane %v695_v10, 1  ;;  %v712_v15 = vadd.f32 %v711_v9, %v710_v7 }
 0x61b   :  { %v1676_v60 = vpop.permute.xlu0 %341 }
 0x61c   :  { %472 = vst [vmem:[#allocation8 + $0x10] sm:$0xff] %v457_v58  ;;  %v447_v62 = vadd.f32 %v1593_v39, %v1676_v60  ;;  %v697_v17 = vadd.f32 %v696_v14, %v695_v10  ;;  %v713_v18 = vrot.slane %v712_v15, 1 }
 0x61d   :  { %v1680_v63 = vpop.permute.xlu1 %356 }
 0x61e   :  { %470 = vst [vmem:[#allocation8] sm:$0xff] %v447_v62  ;;  %v462_v48 = vadd.f32 %v1621_v50, %v1680_v63  ;;  %1122 = vpush %v697_v17  ;;  %v714_v43 = vadd.f32 %v713_v18, %v712_v15 }
 0x620   :  { %473 = vst [vmem:[#allocation8 + $0x18] sm:$0xff] %v462_v48  ;;  %1124 = vpush %v714_v43 }
 0x621   :  { %v362_v42 = vpop.permute.xlu1 %361 }
 0x622   :  { %v467_v3 = vadd.f32 %v1623_v52, %v362_v42 }
 0x624   :  { %474 = vst [vmem:[#allocation7] sm:$0xff] %v467_v3 }
 0x64f   :  { %s1123_s4 = spop %1122 }
 0x650   :  { %s699_s18 = smul.f32 0.00024414063, %s1123_s4 }
 0x651   :  { %s1125_s19 = spop %1124 }
 0x652   :  { %s717_s20 = smul.f32 %s699_s18, %s699_s18  ;;  %v719_v50 = vstv %s699_s18 }
 0x653   :  { %s716_s21 = smul.f32 0.00024414063, %s1125_s19  ;;  %v723_v22 = vsub.f32 %v1641_v30, %v719_v50  ;;  %v722_v12 = vsub.f32 %v1639_v40, %v719_v50  ;;  %v721_v13 = vsub.f32 %v1635_v32, %v719_v50  ;;  %v720_v26 = vsub.f32 %v1633_v16, %v719_v50 }
 0x655   :  { %s718_s22 = ssub.f32 %s716_s21, %s717_s20 }
 0x657   :  { %s724_s27 = sadd.f32 1e-05, %s718_s22 }
 0x659   :  { %v725_v39 = vstv %s724_s27 }
 0x65a   :  { %1195 = vrsqrt.f32 %v725_v39 }
 0x667   :  { %v1196_v19 = vpop.eup %1195 }
 0x668   :  { %1126 = vpush %v1196_v19 }
 0x699   :  { %s1127_s28 = spop %1126 }
 0x69a   :  { %v728_v24 = vstv %s1127_s28 }
 0x69b   :  { %v732_v52 = vmul.f32 %v728_v24, %v723_v22  ;;  %v731_v25 = vmul.f32 %v728_v24, %v722_v12  ;;  %v730_v28 = vmul.f32 %v728_v24, %v721_v13  ;;  %v729_v29 = vmul.f32 %v728_v24, %v720_v26 }
 0x69d   :  { %1074 = vmatpush3.msra.mxu0 %v732_v52  ;;  %1100 = vmatpush3.msra.mxu1 %v732_v52 }
 0x69e   :  { %1075 = vmatprep.subr.mxu0 %v1291_v35  ;;  %1097 = vmatprep.subr.mxu1 %v1291_v35 }
 0x69f   :  { %1076 = vmatpush3.msra.mxu0 %v731_v25  ;;  %1101 = vmatpush3.msra.mxu1 %v731_v25 }
 0x6a0   :  { %1077 = vmatprep.subr.mxu0 %v1291_v35  ;;  %1098 = vmatprep.subr.mxu1 %v1291_v35 }
 0x6a1   :  { %1078 = vmatpush3.msra.mxu0 %v730_v28  ;;  %1102 = vmatpush3.msra.mxu1 %v730_v28 }
 0x6a2   :  { %1079 = vmatprep.subr.mxu0 %v1291_v35  ;;  %1099 = vmatprep.subr.mxu1 %v1291_v35 }
 0x6a3   :  { %1080 = vmatpush3.msra.mxu0 %v729_v29  ;;  %1103 = vmatpush3.msra.mxu1 %v729_v29 }
 0x6a4   :  { %1082 = vmatmul.mubr.msk.f32.vlgmr.msra.gmra.mxu0 %vm364_vm3, %v1518_v61  ;;  %1094 = vmatmul.mubr.msk.f32.vlgmr.msra.gmra.mxu1 %vm364_vm3, %v1558_v27 }
 0x6a5   :  { %1084 = vmatprep.mubr.msk.f32.mxu0 %vm1292_vm2, %v1291_v35 }
 0x6a8   :  { %1085 = vmatmul.mubr.msk.f32.gmra.mxu0 %vm364_vm3, %v1528_v41 }
 0x6a9   :  { %1087 = vmatprep.mubr.msk.f32.mxu0 %vm1292_vm2, %v1291_v35 }
 0x6ac   :  { %1088 = vmatmul.mubr.msk.f32.gmra.mxu0 %vm364_vm3, %v1537_v20 }
 0x6ad   :  { %1090 = vmatprep.mubr.msk.f32.mxu0 %vm1292_vm2, %v1291_v35 }
 0x6b0   :  { %1091 = vmatmul.mubr.msk.f32.gmra.mxu0 %vm364_vm3, %v1547_v23 }
 0x764   :  { %v799_v61 = vpop.f32.mrf.mxu0  ;;  %v819_v27 = vpop.f32.mrf.mxu1 }
 0x765   :  { %v800_v16 = vadd.f32 %v799_v61, %v1676_v60  ;;  %v820_v32 = vadd.f32 %v819_v27, %v362_v42 }
 0x766   :  { %v1083_v41 = vpop.f32.mrf.mxu0  ;;  %v1095_v38 = vpop.f32.mrf.mxu1 }
 0x767   :  { %824 = vst [vmem:[#allocation8 + $0x20] sm:$0xff] %v800_v16  ;;  %829 = vst [vmem:[#allocation7 + $0x8] sm:$0xff] %v820_v32 }
 0x768   :  { %v804_v47 = vpop.f32.mrf.mxu0 }
 0x769   :  { %1248 = shalt.err (!%p1245_p0)
}
 0x76a   :  { %841 = dma.vmem_to_hbm [thread:$0]  %s836_s30, 256, %s1732_s5, [#allocation4], %s1286_s24, %s1286_s24, %s1287_s25   ;;  %v805_v35 = vadd.f32 %v804_v47, %v1668_v5  ;;  %v1086_v20 = vpop.f32.mrf.mxu0 }
 0x76b   :  { %s1295_s9 = smov [#allocation8]  }
 0x76c   :  { %825 = vst [vmem:[#allocation8 + $0x28] sm:$0xff] %v805_v35  ;;  %v809_v23 = vpop.f32.mrf.mxu0  ;;  %s847_s0 = sshll.u32 %s1295_s9, 4  ;;  %s848_s0 = int_to_ptr.vmem [resolvable:$true] %s847_s0 }
 0x76d   :  { %v810_v21 = vadd.f32 %v809_v23, %v1672_v11  ;;  %s1257_s10 = scalar_lea.vmem %s848_s0, 1024  ;;  %p1262_p2 = scmp.lt.s32.totalorder %s848_s0, %s848_s0 }
 0x76e   :  { %v1089_v33 = vpop.f32.mrf.mxu0  ;;  %p1258_p1 = scmp.ne.s32.totalorder %s848_s0, %s1257_s10  ;;  %p1263_p3 = scmp.lt.s32.totalorder %s1257_s10, %s1257_s10 }
 0x76f   :  { %826 = vst [vmem:[#allocation8 + $0x30] sm:$0xff] %v810_v21 }
 0x770   :  { %v814_v40 = vpop.f32.mrf.mxu0  ;;  %p1264_p4 = por %p1263_p3, %p1262_p2 }
 0x771   :  { %v815_v30 = vadd.f32 %v814_v40, %v1680_v63 }
 0x772   :  { %v1092_v31 = vpop.f32.mrf.mxu0  ;;  %p1265_p5 = pnand %p1264_p4, %p1258_p1 }
 0x773   :  { %827 = vst [vmem:[#allocation8 + $0x38] sm:$0xff] %v815_v30 }
 0x774   :  { %1268 = shalt.err (!%p1265_p5)
}
 0x775   :  { %853 = dma.vmem_to_hbm [thread:$0]  %s848_s0, 1024, %s1733_s6, [#allocation9], %s1286_s24, %s1286_s24, %s1287_s25  }
 0x776   :  { %1281 = dma.done.wait [#allocation4], 256  }
 0x777   :  { %1282 = vsyncadd [#allocation4], 4294967040 }
 0x778   :  { %1283 = dma.done.wait [#allocation9], 1024  }
 0x779   :  { %1284 = vsyncadd [#allocation9], 4294966272 }
 0x77a   :  { %860 = vsyncpa [#allocation3], 1 }
 0x77b   :  { %861 = vsyncpa [#allocation6], 1 }
 0x77c   :  { %862 = vsyncpa [#allocation4], 1 }
 0x77d   :  { %863 = vsyncpa [#allocation9], 1 }

</bundles_post_ra>
